<compile_context>
chip_gen: v6e
topology: v6e:2x2x1
jax: 0.10.0
libtpu: 0.0.40
codegen_flags: <defaults>
</compile_context>

<pallas_src>
import math
from functools import partial

import jax
import jax.numpy as jnp
import numpy as np
from jax import lax
from jax.experimental import pallas as pl
from jax.experimental.pallas import tpu as pltpu


def _round_up(x, m):
    return ((x + m - 1) // m) * m


def _tritotnet_kernel(x_ref,
                      sw1_ref, sb1_ref, sw2_ref, sb2_ref,
                      w1_ref, b1_ref, w2_ref, b2_ref, w3_ref, b3_ref,
                      o_ref, *, scale):
    """One batch tile: (TB, PD) f32 -> (TB, out_dim) bf16."""
    # Cast the streamed f32 tile to bf16 in VMEM (VPU) instead of materializing
    # a bf16 copy of x in HBM in the wrapper (halves x-related HBM traffic).
    x = x_ref[...].astype(jnp.bfloat16)                          # (TB, PD)

    # Per-phone subnets as block-diagonal matmuls: Linear -> ReLU -> Linear.
    h = jnp.dot(x, sw1_ref[...], preferred_element_type=jnp.float32) + sb1_ref[...]
    h = jnp.maximum(h, 0.0).astype(jnp.bfloat16)                 # (TB, P*S_HID)
    f = jnp.dot(h, sw2_ref[...], preferred_element_type=jnp.float32) + sb2_ref[...]
    f = f.astype(jnp.bfloat16)                                   # (TB, P*SUB_OUT)

    # Shared trunk: Linear -> ReLU -> Linear -> ReLU -> Linear.
    h1 = jnp.maximum(
        jnp.dot(f, w1_ref[...], preferred_element_type=jnp.float32) + b1_ref[...], 0.0
    ).astype(jnp.bfloat16)
    h2 = jnp.maximum(
        jnp.dot(h1, w2_ref[...], preferred_element_type=jnp.float32) + b2_ref[...], 0.0
    ).astype(jnp.bfloat16)
    y = jnp.dot(h2, w3_ref[...], preferred_element_type=jnp.float32) + b3_ref[...]

    # F.normalize(p=2, dim=1, eps=1e-12) * sqrt(out_dim).  rsqrt runs on the EUP
    # slot; the sqrt(out_dim) scale is folded into the (TB, 1) reciprocal so
    # only one (TB, out_dim) VPU multiply remains.
    sumsq = jnp.sum(y * y, axis=-1, keepdims=True)
    inv = lax.rsqrt(jnp.maximum(sumsq, jnp.float32(1e-24))) * jnp.float32(scale)
    # bf16 store halves the narrow-lane (out_dim < 128) masked-store cost.
    # TODO(synk): lane-dense (tb//8, 8*out_dim) repacked output would remove the
    #             masking entirely; skipped to keep lowering risk-free.
    o_ref[...] = (y * inv).astype(o_ref.dtype)


def fuse_tritotnet_params(params):
    """Build the fused / cast weight tuple ONCE (hoisted out of the per-call
    forward path: block_diag + dtype casts are full HBM copies)."""
    (sw1, sb1, sw2, sb2, w1, b1, w2, b2, w3, b3) = params
    phone_num = sw1.shape[0]
    # TODO(synk): beyond phone_num ~ 8 the block-diagonal weights are mostly
    #             zeros (O(phone_num^2) VMEM / MXU work); switch to a
    #             phone-batched dot_general or a per-phone grid axis instead.
    sw1_bd = jax.scipy.linalg.block_diag(*[sw1[i] for i in range(phone_num)])
    sw2_bd = jax.scipy.linalg.block_diag(*[sw2[i] for i in range(phone_num)])
    bf = lambda a: a.astype(jnp.bfloat16)
    f32row = lambda a: a.reshape(1, -1).astype(jnp.float32)
    return (bf(sw1_bd), f32row(sb1), bf(sw2_bd), f32row(sb2),
            bf(w1), f32row(b1), bf(w2), f32row(b2), bf(w3), f32row(b3))


def tritotnet_forward(x, fused_params, *, batch_tile=1024, target_splits=4,
                      vmem_budget_bytes=24 << 20):
    """x: (B, 3, phone_num*in_dim) f32 -> (out1, out2, out3), each (B, out_dim) f32."""
    (sw1_bd, sb1_c, sw2_bd, sb2_c, w1b, b1f, w2b, b2f, w3b, b3f) = fused_params
    B, views, PD = x.shape
    assert views == 3 and PD == sw1_bd.shape[0]
    out_dim = w3b.shape[1]

    # Fold the 3 triplet views into rows: (B, 3, PD) -> (3B, PD).  Free,
    # contiguous reshape; stays f32 (cast to bf16 inside the kernel).
    rows = 3 * B
    xf = x.reshape(rows, PD)

    layer_widths = (sw1_bd.shape[1], sw2_bd.shape[1],
                    w1b.shape[1], w2b.shape[1], out_dim)
    weight_bytes = sum(int(np.prod(a.shape)) * a.dtype.itemsize
                       for a in fused_params)

    def step_vmem_bytes(tb):
        # f32 x tile and bf16 out tile are double-buffered by the pipeline;
        # weights are single-buffered (memory_space=VMEM, not pipelined);
        # ~6 B/elem covers the live f32 accumulator + bf16 copy per layer.
        io = 2 * tb * PD * 4 + 2 * tb * out_dim * 2
        inter = tb * 6 * (PD + sum(layer_widths))
        return io + inter + weight_bytes

    # Row granularity 16: the bf16 output tile wants 16-row (packed-sublane)
    # multiples, which also satisfies the f32 input's 8-row requirement.
    rows_g = _round_up(rows, 16)
    # Aim for >= target_splits grid steps (>=2 keeps both v7x TensorCores busy,
    # ~4 also amortizes the ~0.35us/step pipeline overhead), capped by
    # batch_tile and by a generation-safe VMEM budget (v7x: 64 MiB physical).
    tb = min(_round_up(batch_tile, 64),
             max(64, _round_up(pl.cdiv(rows, target_splits), 64)))
    while tb > 64 and step_vmem_bytes(tb) > vmem_budget_bytes:
        tb -= 64
    if rows_g <= tb:
        tb = rows_g                       # whole batch in one (row-padded) tile
    grid = (pl.cdiv(rows, tb),)           # ragged last block: no jnp.pad copy

    # Explicit scoped-VMEM limit (scoped defaults: v5e 16 MiB / v6e+v7x 32 MiB).
    # The budget-driven tb above is what keeps us under v7x's 64 MiB physical.
    vmem_limit = int(min(max(2 * step_vmem_bytes(tb), 32 << 20), 100 << 20))

    # Weights/biases: full arrays, VMEM-resident for the whole kernel and
    # single-buffered (they are constant across the grid, so no double-buffer
    # VMEM or per-step DMA is spent on them).
    w_spec = pl.BlockSpec(memory_space=pltpu.MemorySpace.VMEM)

    out = pl.pallas_call(
        partial(_tritotnet_kernel, scale=math.sqrt(out_dim)),
        out_shape=jax.ShapeDtypeStruct((rows, out_dim), jnp.bfloat16),
        grid=grid,
        in_specs=[pl.BlockSpec((tb, PD), lambda i: (i, 0))] + [w_spec] * 10,
        out_specs=pl.BlockSpec((tb, out_dim), lambda i: (i, 0)),
        compiler_params=pltpu.CompilerParams(
            # Batch-tile axis is independent -> shards across v7x's 2 TCs;
            # neutral on single-core v5e/v6e.
            dimension_semantics=("parallel",),
            vmem_limit_bytes=vmem_limit,
        ),
    )(xf, *fused_params)

    out = out.astype(jnp.float32).reshape(B, 3, out_dim)
    return out[:, 0, :], out[:, 1, :], out[:, 2, :]


def _reference(x, params, *, phone_num, in_dim, out_dim):
    """Pure-JAX f32 mirror of TriTotnet.forward for correctness checking."""
    (sw1, sb1, sw2, sb2, w1, b1, w2, b2, w3, b3) = params

    def one_view(xv):                                  # xv: (B, phone_num*in_dim)
        outs = []
        for i in range(phone_num):
            xi = xv[:, i * in_dim:(i + 1) * in_dim]
            h = jnp.maximum(xi @ sw1[i] + sb1[i], 0.0)
            outs.append(h @ sw2[i] + sb2[i])
        feat = jnp.concatenate(outs, axis=-1)
        h1 = jnp.maximum(feat @ w1 + b1, 0.0)
        h2 = jnp.maximum(h1 @ w2 + b2, 0.0)
        y = h2 @ w3 + b3
        n = jnp.sqrt(jnp.sum(y * y, axis=-1, keepdims=True))
        return (y / jnp.maximum(n, 1e-12)) * jnp.float32(math.sqrt(out_dim))

    return tuple(one_view(x[:, v, :]) for v in range(3))


if __name__ == "__main__":
    # Small, forward-consistent shapes.
    B = 2               # batch
    PHONE = 4           # number of subnets
    IN_DIM = 16         # per-phone i-vector slice dim
    S_HID = 32          # subnet hidden
    SUB_OUT = 16        # subnet output dim
    T_H1, T_H2 = 32, 32 # shared trunk hiddens
    OUT_DIM = 16        # embedding dim

    key = jax.random.PRNGKey(0)
    ks = jax.random.split(key, 12)

    def u(k, shape, fan_in):
        bound = 1.0 / math.sqrt(fan_in)
        return jax.random.uniform(k, shape, jnp.float32, -bound, bound)

    # Subnet params, stacked over phones.  Biases kept 3D for clean reshape.
    sw1 = u(ks[0], (PHONE, IN_DIM, S_HID), IN_DIM)
    sb1 = u(ks[1], (PHONE, 1, S_HID), IN_DIM)
    sw2 = u(ks[2], (PHONE, S_HID, SUB_OUT), S_HID)
    sb2 = u(ks[3], (PHONE, 1, SUB_OUT), S_HID)
    # Shared trunk params.
    w1 = u(ks[4], (PHONE * SUB_OUT, T_H1), PHONE * SUB_OUT)
    b1 = u(ks[5], (1, T_H1), PHONE * SUB_OUT)
    w2 = u(ks[6], (T_H1, T_H2), T_H1)
    b2 = u(ks[7], (1, T_H2), T_H1)
    w3 = u(ks[8], (T_H2, OUT_DIM), T_H2)
    b3 = u(ks[9], (1, OUT_DIM), T_H2)
    params = (sw1, sb1, sw2, sb2, w1, b1, w2, b2, w3, b3)

    # Input: (batch, 3 triplet views, phone_num * in_dim)
    x = jax.random.normal(ks[10], (B, 3, PHONE * IN_DIM), jnp.float32)

    # Weight fusion done ONCE (hoisted out of the per-call forward path).
    fused = jax.block_until_ready(fuse_tritotnet_params(params))

    fwd = jax.jit(tritotnet_forward)
    outs = jax.block_until_ready(fwd(x, fused))

    refs = _reference(x, params, phone_num=PHONE, in_dim=IN_DIM, out_dim=OUT_DIM)
    # bf16 weights/activations/output (f32 accumulation) vs. an exact f32
    # mirror: tolerance widened accordingly; a wrong kernel would be off by O(1).
    for o, r in zip(outs, refs):
        assert o.shape == (B, OUT_DIM)
        np.testing.assert_allclose(np.asarray(o), np.asarray(r), rtol=5e-2, atol=5e-2)

    print("KERNEL_OK")
</pallas_src>

<mosaic_0001>
module attributes {stable_mosaic.version = 11 : i64} {
  func.func @_tritotnet_kernel(%arg0: i32, %arg1: memref<16x64xf32, #tpu.memory_space<vmem>>, %arg2: memref<64x128xbf16, #tpu.memory_space<vmem>>, %arg3: memref<1x128xf32, #tpu.memory_space<vmem>>, %arg4: memref<128x64xbf16, #tpu.memory_space<vmem>>, %arg5: memref<1x64xf32, #tpu.memory_space<vmem>>, %arg6: memref<64x32xbf16, #tpu.memory_space<vmem>>, %arg7: memref<1x32xf32, #tpu.memory_space<vmem>>, %arg8: memref<32x32xbf16, #tpu.memory_space<vmem>>, %arg9: memref<1x32xf32, #tpu.memory_space<vmem>>, %arg10: memref<32x16xbf16, #tpu.memory_space<vmem>>, %arg11: memref<1x16xf32, #tpu.memory_space<vmem>>, %arg12: memref<16x16xbf16, #tpu.memory_space<vmem>>) attributes {dimension_semantics = [#tpu.dimension_semantics<parallel>], iteration_bounds = array<i64: 1>, scalar_prefetch = 0 : i64, scratch_operands = 0 : i64, tpu.core_type = #tpu.core_type<tc>, window_params = [{transform_indices = @transform_0, window_bounds = array<i64: 16, 64>}, {pipeline_mode = #tpu.pipeline_mode<synchronous>, transform_indices = @transform_1, window_bounds = array<i64: 64, 128>}, {pipeline_mode = #tpu.pipeline_mode<synchronous>, transform_indices = @transform_2, window_bounds = array<i64: 1, 128>}, {pipeline_mode = #tpu.pipeline_mode<synchronous>, transform_indices = @transform_3, window_bounds = array<i64: 128, 64>}, {pipeline_mode = #tpu.pipeline_mode<synchronous>, transform_indices = @transform_4, window_bounds = array<i64: 1, 64>}, {pipeline_mode = #tpu.pipeline_mode<synchronous>, transform_indices = @transform_5, window_bounds = array<i64: 64, 32>}, {pipeline_mode = #tpu.pipeline_mode<synchronous>, transform_indices = @transform_6, window_bounds = array<i64: 1, 32>}, {pipeline_mode = #tpu.pipeline_mode<synchronous>, transform_indices = @transform_7, window_bounds = array<i64: 32, 32>}, {pipeline_mode = #tpu.pipeline_mode<synchronous>, transform_indices = @transform_8, window_bounds = array<i64: 1, 32>}, {pipeline_mode = #tpu.pipeline_mode<synchronous>, transform_indices = @transform_9, window_bounds = array<i64: 32, 16>}, {pipeline_mode = #tpu.pipeline_mode<synchronous>, transform_indices = @transform_10, window_bounds = array<i64: 1, 16>}, {transform_indices = @transform_11, window_bounds = array<i64: 16, 16>}]} {
    %c0 = arith.constant 0 : index
    %c0_0 = arith.constant 0 : index
    %0 = vector.load %arg1[%c0, %c0_0] : memref<16x64xf32, #tpu.memory_space<vmem>>, vector<16x64xf32>
    %1 = arith.truncf %0 : vector<16x64xf32> to vector<16x64xbf16>
    %c0_1 = arith.constant 0 : index
    %c0_2 = arith.constant 0 : index
    %2 = vector.load %arg2[%c0_1, %c0_2] : memref<64x128xbf16, #tpu.memory_space<vmem>>, vector<64x128xbf16>
    %cst = arith.constant dense<0.000000e+00> : vector<16x128xf32>
    %3 = tpu.matmul %1, %2, %cst {dimension_numbers = #tpu.dot_dimension_numbers<[1], [0], [0], [1], [0, 0, 1, 1], [], []>} : vector<16x64xbf16>, vector<64x128xbf16>, vector<16x128xf32> -> vector<16x128xf32>
    %c0_3 = arith.constant 0 : index
    %c0_4 = arith.constant 0 : index
    %4 = vector.load %arg3[%c0_3, %c0_4] : memref<1x128xf32, #tpu.memory_space<vmem>>, vector<1x128xf32>
    %5 = vector.broadcast %4 : vector<1x128xf32> to vector<16x128xf32>
    %6 = arith.addf %3, %5 : vector<16x128xf32>
    %cst_5 = arith.constant 0.000000e+00 : f32
    %7 = vector.broadcast %cst_5 : f32 to vector<16x128xf32>
    %8 = arith.maximumf %6, %7 : vector<16x128xf32>
    %9 = arith.truncf %8 : vector<16x128xf32> to vector<16x128xbf16>
    %c0_6 = arith.constant 0 : index
    %c0_7 = arith.constant 0 : index
    %10 = vector.load %arg4[%c0_6, %c0_7] : memref<128x64xbf16, #tpu.memory_space<vmem>>, vector<128x64xbf16>
    %cst_8 = arith.constant dense<0.000000e+00> : vector<16x64xf32>
    %11 = tpu.matmul %9, %10, %cst_8 {dimension_numbers = #tpu.dot_dimension_numbers<[1], [0], [0], [1], [0, 0, 1, 1], [], []>} : vector<16x128xbf16>, vector<128x64xbf16>, vector<16x64xf32> -> vector<16x64xf32>
    %c0_9 = arith.constant 0 : index
    %c0_10 = arith.constant 0 : index
    %12 = vector.load %arg5[%c0_9, %c0_10] : memref<1x64xf32, #tpu.memory_space<vmem>>, vector<1x64xf32>
    %13 = vector.broadcast %12 : vector<1x64xf32> to vector<16x64xf32>
    %14 = arith.addf %11, %13 : vector<16x64xf32>
    %15 = arith.truncf %14 : vector<16x64xf32> to vector<16x64xbf16>
    %c0_11 = arith.constant 0 : index
    %c0_12 = arith.constant 0 : index
    %16 = vector.load %arg6[%c0_11, %c0_12] : memref<64x32xbf16, #tpu.memory_space<vmem>>, vector<64x32xbf16>
    %cst_13 = arith.constant dense<0.000000e+00> : vector<16x32xf32>
    %17 = tpu.matmul %15, %16, %cst_13 {dimension_numbers = #tpu.dot_dimension_numbers<[1], [0], [0], [1], [0, 0, 1, 1], [], []>} : vector<16x64xbf16>, vector<64x32xbf16>, vector<16x32xf32> -> vector<16x32xf32>
    %c0_14 = arith.constant 0 : index
    %c0_15 = arith.constant 0 : index
    %18 = vector.load %arg7[%c0_14, %c0_15] : memref<1x32xf32, #tpu.memory_space<vmem>>, vector<1x32xf32>
    %19 = vector.broadcast %18 : vector<1x32xf32> to vector<16x32xf32>
    %20 = arith.addf %17, %19 : vector<16x32xf32>
    %cst_16 = arith.constant 0.000000e+00 : f32
    %21 = vector.broadcast %cst_16 : f32 to vector<16x32xf32>
    %22 = arith.maximumf %20, %21 : vector<16x32xf32>
    %23 = arith.truncf %22 : vector<16x32xf32> to vector<16x32xbf16>
    %c0_17 = arith.constant 0 : index
    %c0_18 = arith.constant 0 : index
    %24 = vector.load %arg8[%c0_17, %c0_18] : memref<32x32xbf16, #tpu.memory_space<vmem>>, vector<32x32xbf16>
    %cst_19 = arith.constant dense<0.000000e+00> : vector<16x32xf32>
    %25 = tpu.matmul %23, %24, %cst_19 {dimension_numbers = #tpu.dot_dimension_numbers<[1], [0], [0], [1], [0, 0, 1, 1], [], []>} : vector<16x32xbf16>, vector<32x32xbf16>, vector<16x32xf32> -> vector<16x32xf32>
    %c0_20 = arith.constant 0 : index
    %c0_21 = arith.constant 0 : index
    %26 = vector.load %arg9[%c0_20, %c0_21] : memref<1x32xf32, #tpu.memory_space<vmem>>, vector<1x32xf32>
    %27 = vector.broadcast %26 : vector<1x32xf32> to vector<16x32xf32>
    %28 = arith.addf %25, %27 : vector<16x32xf32>
    %cst_22 = arith.constant 0.000000e+00 : f32
    %29 = vector.broadcast %cst_22 : f32 to vector<16x32xf32>
    %30 = arith.maximumf %28, %29 : vector<16x32xf32>
    %31 = arith.truncf %30 : vector<16x32xf32> to vector<16x32xbf16>
    %c0_23 = arith.constant 0 : index
    %c0_24 = arith.constant 0 : index
    %32 = vector.load %arg10[%c0_23, %c0_24] : memref<32x16xbf16, #tpu.memory_space<vmem>>, vector<32x16xbf16>
    %cst_25 = arith.constant dense<0.000000e+00> : vector<16x16xf32>
    %33 = tpu.matmul %31, %32, %cst_25 {dimension_numbers = #tpu.dot_dimension_numbers<[1], [0], [0], [1], [0, 0, 1, 1], [], []>} : vector<16x32xbf16>, vector<32x16xbf16>, vector<16x16xf32> -> vector<16x16xf32>
    %c0_26 = arith.constant 0 : index
    %c0_27 = arith.constant 0 : index
    %34 = vector.load %arg11[%c0_26, %c0_27] : memref<1x16xf32, #tpu.memory_space<vmem>>, vector<1x16xf32>
    %35 = vector.broadcast %34 : vector<1x16xf32> to vector<16x16xf32>
    %36 = arith.addf %33, %35 : vector<16x16xf32>
    %37 = arith.mulf %36, %36 : vector<16x16xf32>
    %cst_28 = arith.constant dense<0.000000e+00> : vector<16xf32>
    %38 = vector.multi_reduction <add>, %37, %cst_28 [1] : vector<16x16xf32> to vector<16xf32>
    %39 = vector.shape_cast %38 : vector<16xf32> to vector<16x1xf32>
    %cst_29 = arith.constant 1.000000e-24 : f32
    %40 = vector.broadcast %cst_29 : f32 to vector<16x1xf32>
    %41 = arith.maximumf %39, %40 : vector<16x1xf32>
    %42 = math.rsqrt %41 : vector<16x1xf32>
    %cst_30 = arith.constant 4.000000e+00 : f32
    %43 = vector.broadcast %cst_30 : f32 to vector<16x1xf32>
    %44 = arith.mulf %42, %43 : vector<16x1xf32>
    %45 = vector.broadcast %44 : vector<16x1xf32> to vector<16x16xf32>
    %46 = arith.mulf %36, %45 : vector<16x16xf32>
    %47 = arith.truncf %46 : vector<16x16xf32> to vector<16x16xbf16>
    %c0_31 = arith.constant 0 : index
    %c0_32 = arith.constant 0 : index
    %48 = vector.load %arg12[%c0_31, %c0_32] : memref<16x16xbf16, #tpu.memory_space<vmem>>, vector<16x16xbf16>
    tpu.vector_store %arg12[%c0_31, %c0_32], %47 {strides = array<i32>} : memref<16x16xbf16, #tpu.memory_space<vmem>>, vector<16x16xbf16>,
    return
  }
  func.func @transform_0(%arg0: i32) -> (i32, i32) {
    %c0_i32 = arith.constant 0 : i32
    %c0_i32_0 = arith.constant 0 : i32
    return %arg0, %c0_i32 : i32, i32
  }
  func.func @transform_1(%arg0: i32) -> (i32, i32) {
    %c0_i32 = arith.constant 0 : i32
    %c0_i32_0 = arith.constant 0 : i32
    %c0_i32_1 = arith.constant 0 : i32
    return %c0_i32, %c0_i32_0 : i32, i32
  }
  func.func @transform_2(%arg0: i32) -> (i32, i32) {
    %c0_i32 = arith.constant 0 : i32
    %c0_i32_0 = arith.constant 0 : i32
    %c0_i32_1 = arith.constant 0 : i32
    return %c0_i32, %c0_i32_0 : i32, i32
  }
  func.func @transform_3(%arg0: i32) -> (i32, i32) {
    %c0_i32 = arith.constant 0 : i32
    %c0_i32_0 = arith.constant 0 : i32
    %c0_i32_1 = arith.constant 0 : i32
    return %c0_i32, %c0_i32_0 : i32, i32
  }
  func.func @transform_4(%arg0: i32) -> (i32, i32) {
    %c0_i32 = arith.constant 0 : i32
    %c0_i32_0 = arith.constant 0 : i32
    %c0_i32_1 = arith.constant 0 : i32
    return %c0_i32, %c0_i32_0 : i32, i32
  }
  func.func @transform_5(%arg0: i32) -> (i32, i32) {
    %c0_i32 = arith.constant 0 : i32
    %c0_i32_0 = arith.constant 0 : i32
    %c0_i32_1 = arith.constant 0 : i32
    return %c0_i32, %c0_i32_0 : i32, i32
  }
  func.func @transform_6(%arg0: i32) -> (i32, i32) {
    %c0_i32 = arith.constant 0 : i32
    %c0_i32_0 = arith.constant 0 : i32
    %c0_i32_1 = arith.constant 0 : i32
    return %c0_i32, %c0_i32_0 : i32, i32
  }
  func.func @transform_7(%arg0: i32) -> (i32, i32) {
    %c0_i32 = arith.constant 0 : i32
    %c0_i32_0 = arith.constant 0 : i32
    %c0_i32_1 = arith.constant 0 : i32
    return %c0_i32, %c0_i32_0 : i32, i32
  }
  func.func @transform_8(%arg0: i32) -> (i32, i32) {
    %c0_i32 = arith.constant 0 : i32
    %c0_i32_0 = arith.constant 0 : i32
    %c0_i32_1 = arith.constant 0 : i32
    return %c0_i32, %c0_i32_0 : i32, i32
  }
  func.func @transform_9(%arg0: i32) -> (i32, i32) {
    %c0_i32 = arith.constant 0 : i32
    %c0_i32_0 = arith.constant 0 : i32
    %c0_i32_1 = arith.constant 0 : i32
    return %c0_i32, %c0_i32_0 : i32, i32
  }
  func.func @transform_10(%arg0: i32) -> (i32, i32) {
    %c0_i32 = arith.constant 0 : i32
    %c0_i32_0 = arith.constant 0 : i32
    %c0_i32_1 = arith.constant 0 : i32
    return %c0_i32, %c0_i32_0 : i32, i32
  }
  func.func @transform_11(%arg0: i32) -> (i32, i32) {
    %c0_i32 = arith.constant 0 : i32
    %c0_i32_0 = arith.constant 0 : i32
    return %arg0, %c0_i32 : i32, i32
  }
}

</mosaic_0001>

<bundles_post_ra>
// kernel: tritotnet_forward.1
= control target key start
LH: loop header
LB: loop body
LE: loop exit
PB: predicated region body
PF: predicated region fallthrough
CT: control target
= control target key end

     0   :  { %v679_v1 = vmov 0.0   ;;  %vm680_vm0 = vmmov 0   ;;  %vm81_vm1 = vcmask 523264   ;;  %vm351_vm2 = vcmask 261120   ;;  %s859_s0 = inlined_call_operand.vmem [shape: f32[6,64], index: 0, kind: input, shape index: {}]   ;;  %s860_s1 = inlined_call_operand.vmem [shape: bf16[64,128], index: 1, kind: input, shape index: {}]   ;;  %s861_s2 = inlined_call_operand.vmem [shape: f32[1,128], index: 2, kind: input, shape index: {}]   ;;  %s862_s3 = inlined_call_operand.vmem [shape: bf16[128,64], index: 3, kind: input, shape index: {}]   ;;  %s863_s4 = inlined_call_operand.vmem [shape: f32[1,64], index: 4, kind: input, shape index: {}]   ;;  %s864_s5 = inlined_call_operand.vmem [shape: bf16[64,32], index: 5, kind: input, shape index: {}]   ;;  %s865_s6 = inlined_call_operand.vmem [shape: f32[1,32], index: 6, kind: input, shape index: {}]   ;;  %s866_s7 = inlined_call_operand.vmem [shape: bf16[32,32], index: 7, kind: input, shape index: {}]   ;;  %s867_s8 = inlined_call_operand.vmem [shape: f32[1,32], index: 8, kind: input, shape index: {}]   ;;  %s868_s9 = inlined_call_operand.vmem [shape: bf16[32,16], index: 9, kind: input, shape index: {}]   ;;  %s869_s10 = inlined_call_operand.vmem [shape: f32[1,16], index: 10, kind: input, shape index: {}]   ;;  %s870_s11 = inlined_call_operand.vmem [shape: bf16[6,16], index: 11, kind: output, shape index: {}]  }
   0x1   :  { %v655_v0 = vld [vmem:[%s860_s1 + $0x18] sm:$0xff]   ;;  %593 = vmatprep.subr.bf16.mxu0 %v679_v1  ;;  %605 = vmatprep.subr.bf16.mxu1 %v679_v1  ;;  %v656_v2 = vld [vmem:[%s860_s1 + $0x10] sm:$0xff]   ;;  %v657_v4 = vld [vmem:[%s860_s1 + $0x8] sm:$0xff]   ;;  %vm468_vm3 = vcmask 130048   ;;  %vm491_vm4 = vcmask 125952  }
   0x2   :  { %594 = vmatpush3.bf16.msra.mxu0 %v655_v0  ;;  %601 = vmatprep.mubr.msk.bf16.mxu0 %vm680_vm0, %v679_v1  ;;  %v659_v3 = vld [vmem:[%s862_s3 + $0x38] sm:$0xff]   ;;  %v660_v5 = vld [vmem:[%s862_s3 + $0x30] sm:$0xff]   ;;  %v658_v6 = vld [vmem:[%s860_s1] sm:$0xff]  }
   0x3   :  { %595 = vmatprep.subr.bf16.mxu0 %v679_v1  ;;  %621 = vmatprep.mubr.msk.bf16.mxu1 %vm680_vm0, %v679_v1  ;;  %v39_v7 = vld [vmem:[%s859_s0] sm:$0xff]  ;;  %v40_v8 = vld [vmem:[%s859_s0 + $0x8] sm:$0xff]  ;;  %v663_v12 = vld [vmem:[%s862_s3 + $0x18] sm:$0xff]  }
   0x4   :  { %606 = vmatpush3.bf16.msra.mxu1 %v659_v3  ;;  %v661_v9 = vld [vmem:[%s862_s3 + $0x28] sm:$0xff]   ;;  %v41_v10 = vpack.c.bf16 %v40_v8, %v39_v7  ;;  %v662_v11 = vld [vmem:[%s862_s3 + $0x20] sm:$0xff]   ;;  %v664_v13 = vld [vmem:[%s862_s3 + $0x10] sm:$0xff]  }
   0x5   :  { %607 = vmatprep.subr.bf16.mxu1 %v679_v1  ;;  %v665_v14 = vld [vmem:[%s862_s3 + $0x8] sm:$0xff]   ;;  %v666_v15 = vld [vmem:[%s862_s3] sm:$0xff]   ;;  %v667_v16 = vld [vmem:[%s864_s5 + $0x18] sm:$0xff]  }
   0x6   :  { %596 = vmatpush3.bf16.msra.mxu0 %v656_v2  ;;  %v668_v17 = vld [vmem:[%s864_s5 + $0x10] sm:$0xff]   ;;  %v535_v18 = vld [vmem:[%s861_s2] ss:$0 sm:$0xff]  ;;  %v669_v28 = vld [vmem:[%s864_s5 + $0x8] sm:$0xff]  }
   0x7   :  { %597 = vmatprep.subr.bf16.mxu0 %v679_v1  ;;  %v670_v29 = vld [vmem:[%s864_s5] sm:$0xff]   ;;  %v671_v38 = vld [vmem:[%s866_s7 + $0x8] sm:$0xff]  }
   0x8   :  { %608 = vmatpush3.bf16.msra.mxu1 %v660_v5  ;;  %v541_v31 = vld [vmem:[%s863_s4] ss:$0 sm:$0xff]  ;;  %v673_v50 = vld [vmem:[%s868_s9 + $0x8] sm:$0xff]  }
   0x9   :  { %609 = vmatprep.subr.bf16.mxu1 %v679_v1  ;;  %v672_v39 = vld [vmem:[%s866_s7] sm:$0xff]  }
   0xa   :  { %598 = vmatpush3.bf16.msra.mxu0 %v657_v4  ;;  %v550_v40 = vld [vmem:[%s865_s6] ss:$0 sm:$0xff] }
   0xb   :  { %599 = vmatprep.subr.bf16.mxu0 %v679_v1  ;;  %v674_v51 = vld [vmem:[%s868_s9] sm:$0xff]  }
   0xc   :  { %610 = vmatpush3.bf16.msra.mxu1 %v661_v9  ;;  %v556_v52 = vld [vmem:[%s867_s8] ss:$0 sm:$0xff] }
   0xd   :  { %611 = vmatprep.subr.bf16.mxu1 %v679_v1  ;;  %v560_v62 = vld [vmem:[%s869_s10] ss:$0 sm:$0xff] }
   0xe   :  { %600 = vmatpush3.bf16.msra.mxu0 %v658_v6 }
   0xf   :  { %625 = vmatprep.subr.bf16.mxu0 %v679_v1 }
  0x10   :  { %612 = vmatpush3.bf16.msra.mxu1 %v662_v11 }
  0x11   :  { %602 = vmatmul.mubr.msk.bf16.vlgmr.msra.gmra.mxu0 %vm81_vm1, %v41_v10  ;;  %613 = vmatprep.subr.bf16.mxu1 %v679_v1 }
  0x12   :  { %633 = vmatprep.mubr.msk.bf16.mxu0 %vm680_vm0, %v679_v1  ;;  %626 = vmatpush3.bf16.msra.mxu0 %v667_v16 }
  0x13   :  { %627 = vmatprep.subr.bf16.mxu0 %v679_v1 }
  0x14   :  { %614 = vmatpush3.bf16.msra.mxu1 %v663_v12 }
  0x15   :  { %615 = vmatprep.subr.bf16.mxu1 %v679_v1 }
  0x16   :  { %628 = vmatpush3.bf16.msra.mxu0 %v668_v17 }
  0x17   :  { %629 = vmatprep.subr.bf16.mxu0 %v679_v1 }
  0x18   :  { %616 = vmatpush3.bf16.msra.mxu1 %v664_v13 }
  0x19   :  { %617 = vmatprep.subr.bf16.mxu1 %v679_v1 }
  0x1a   :  { %630 = vmatpush3.bf16.msra.mxu0 %v669_v28 }
  0x1b   :  { %631 = vmatprep.subr.bf16.mxu0 %v679_v1 }
  0x1c   :  { %618 = vmatpush3.bf16.msra.mxu1 %v665_v14 }
  0x1d   :  { %619 = vmatprep.subr.bf16.mxu1 %v679_v1 }
  0x1e   :  { %632 = vmatpush3.bf16.msra.mxu0 %v670_v29 }
  0x1f   :  { %637 = vmatprep.subr.bf16.mxu0 %v679_v1 }
  0x20   :  { %620 = vmatpush3.bf16.msra.mxu1 %v666_v15 }
  0x21   :  { %645 = vmatprep.subr.bf16.mxu1 %v679_v1 }
  0xd1   :  { %v119_v19 = vpop.f32.mrf.mxu0 }
  0xd2   :  { %v120_v21 = vadd.f32 %v535_v18, %v119_v19 }
  0xd3   :  { %v603_v20 = vpop.f32.mrf.mxu0 }
  0xd4   :  { %v126_v25 = vmax.f32 %v120_v21, 0.0 }
  0xd5   :  { %v122_v22 = vpop.f32.mrf.mxu0 }
  0xd6   :  { %v123_v23 = vadd.f32 %v535_v18, %v122_v22 }
  0xd7   :  { %v604_v24 = vpop.f32.mrf.mxu0 }
  0xd8   :  { %v127_v26 = vmax.f32 %v123_v23, 0.0 }
  0xda   :  { %v128_v27 = vpack.c.bf16 %v127_v26, %v126_v25 }
  0xdc   :  { %622 = vmatmul.mubr.bf16.vlgmr.msra.gmra.mxu1 %v128_v27 }
  0xdd   :  { %649 = vmatprep.mubr.msk.bf16.mxu1 %vm680_vm0, %v679_v1  ;;  %646 = vmatpush3.bf16.msra.mxu1 %v673_v50 }
  0xde   :  { %647 = vmatprep.subr.bf16.mxu1 %v679_v1 }
  0xe1   :  { %648 = vmatpush3.bf16.msra.mxu1 %v674_v51 }
 0x19c   :  { %v234_v30 = vpop.f32.mrf.mxu1 }
 0x19d   :  { %v235_v34 = vadd.f32 %v541_v31, %v234_v30 }
 0x19e   :  { %v623_v32 = vpop.f32.mrf.mxu1 }
 0x1a0   :  { %v237_v33 = vpop.f32.mrf.mxu1 }
 0x1a1   :  { %v238_v35 = vadd.f32 %v541_v31, %v237_v33 }
 0x1a2   :  { %v624_v36 = vpop.f32.mrf.mxu1 }
 0x1a3   :  { %v241_v37 = vpack.c.bf16 %v238_v35, %v235_v34 }
 0x1a5   :  { %634 = vmatmul.mubr.msk.bf16.vlgmr.msra.gmra.mxu0 %vm81_vm1, %v241_v37 }
 0x1a6   :  { %641 = vmatprep.mubr.msk.bf16.mxu0 %vm680_vm0, %v679_v1  ;;  %638 = vmatpush3.bf16.msra.mxu0 %v671_v38 }
 0x1a7   :  { %639 = vmatprep.subr.bf16.mxu0 %v679_v1 }
 0x1aa   :  { %640 = vmatpush3.bf16.msra.mxu0 %v672_v39 }
 0x265   :  { %v318_v41 = vpop.f32.mrf.mxu0 }
 0x266   :  { %v319_v43 = vadd.f32 %v550_v40, %v318_v41 }
 0x267   :  { %v635_v42 = vpop.f32.mrf.mxu0 }
 0x268   :  { %v325_v47 = vmax.f32 %v319_v43, 0.0 }
 0x269   :  { %v321_v44 = vpop.f32.mrf.mxu0 }
 0x26a   :  { %v322_v45 = vadd.f32 %v550_v40, %v321_v44 }
 0x26b   :  { %v636_v46 = vpop.f32.mrf.mxu0 }
 0x26c   :  { %v326_v48 = vmax.f32 %v322_v45, 0.0 }
 0x26e   :  { %v327_v49 = vpack.c.bf16 %v326_v48, %v325_v47 }
 0x270   :  { %642 = vmatmul.mubr.msk.bf16.vlgmr.msra.gmra.mxu0 %vm351_vm2, %v327_v49 }
 0x330   :  { %v389_v53 = vpop.f32.mrf.mxu0 }
 0x331   :  { %v390_v55 = vadd.f32 %v556_v52, %v389_v53 }
 0x332   :  { %v643_v54 = vpop.f32.mrf.mxu0 }
 0x333   :  { %v396_v59 = vmax.f32 %v390_v55, 0.0 }
 0x334   :  { %v392_v56 = vpop.f32.mrf.mxu0 }
 0x335   :  { %v393_v57 = vadd.f32 %v556_v52, %v392_v56 }
 0x336   :  { %v644_v58 = vpop.f32.mrf.mxu0 }
 0x337   :  { %v397_v60 = vmax.f32 %v393_v57, 0.0 }
 0x339   :  { %v398_v61 = vpack.c.bf16 %v397_v60, %v396_v59 }
 0x33b   :  { %650 = vmatmul.mubr.msk.bf16.vlgmr.msra.gmra.mxu1 %vm351_vm2, %v398_v61 }
 0x3fb   :  { %v459_v63 = vpop.f32.mrf.mxu1 }
 0x3fc   :  { %v460_v0 = vadd.f32 %v560_v62, %v459_v63 }
 0x3fd   :  { %v651_v1 = vpop.f32.mrf.mxu1 }
 0x3fe   :  { %v466_v2 = vmul.f32 %v460_v0, %v460_v0 }
 0x3ff   :  { %v462_v3 = vpop.f32.mrf.mxu1 }
 0x400   :  { %v463_v4 = vadd.f32 %v560_v62, %v462_v3  ;;  %v469_v5 = vsel %vm468_vm3, %v466_v2, 0.0 }
 0x401   :  { %470 = vadd.xlane.f32.xlu0 %v469_v5  ;;  %v652_v6 = vpop.f32.mrf.mxu1 }
 0x402   :  { %v467_v7 = vmul.f32 %v463_v4, %v463_v4 }
 0x404   :  { %v472_v8 = vsel %vm468_vm3, %v467_v7, 0.0 }
 0x405   :  { %473 = vadd.xlane.f32.xlu0 %v472_v8 }
 0x48a   :  { %v471_v9 = vpop.xlane.xlu0 %470 }
 0x48b   :  { %v475_v10 = vmax.f32 %v471_v9, 1e-24 }
 0x48d   :  { %675 = vrsqrt.f32 %v475_v10 }
 0x48e   :  { %v474_v11 = vpop.xlane.xlu0 %473 }
 0x48f   :  { %v476_v12 = vmax.f32 %v474_v11, 1e-24 }
 0x491   :  { %677 = vrsqrt.f32 %v476_v12 }
 0x49a   :  { %v676_v13 = vpop.eup %675 }
 0x49b   :  { %v479_v14 = vmul.f32 4.0, %v676_v13 }
 0x49d   :  { %v481_v15 = vmul.f32 %v479_v14, %v460_v0 }
 0x49e   :  { %v678_v16 = vpop.eup %677 }
 0x49f   :  { %v566_v17 = vpack.c.bf16 %v481_v15, %v481_v15 }
 0x4a1   :  { %492 = vst.msk [vmem:[#allocation2] sm:$0xf] %vm491_vm4, %v566_v17 }
 0x4a8   :  { %v512_v18 = vld [vmem:[#allocation2] sm:$0xf] }
 0x4a9   :  { %513 = vst [vmem:[%s870_s11] sm:$0xf] %v512_v18 }

</bundles_post_ra>
